<compile_context>
chip_gen: v6e
topology: v6e:2x2x1
jax: 0.10.0
libtpu: 0.0.40
codegen_flags: <defaults>
</compile_context>

<pallas_src>
import jax
import jax.numpy as jnp
from jax.experimental import pallas as pl
from jax.experimental.pallas import tpu as pltpu


def _round_up(x: int, m: int) -> int:
    return (x + m - 1) // m * m


def value_net_kernel(x_ref, w1_ref, b1_ref, w2_ref, b2_ref, w3_ref, b3_ref, o_ref):
    mm_dtype = w1_ref.dtype  # f32 (default, PyTorch parity) or bf16 MXU operands

    x = x_ref[...]                                            # (TB, S) f32, unpadded S
    # fc1 + ReLU (MXU matmul with f32 accumulation; bias/ReLU in f32 on the VPU)
    h1 = jnp.dot(x.astype(mm_dtype), w1_ref[...],
                 preferred_element_type=jnp.float32)
    h1 = jnp.maximum(h1 + b1_ref[...], 0.0)
    # fc2 + ReLU
    h2 = jnp.dot(h1.astype(mm_dtype), w2_ref[...],
                 preferred_element_type=jnp.float32)
    h2 = jnp.maximum(h2 + b2_ref[...], 0.0)
    # Value head (out_features == 1): VPU multiply + lane reduction instead of a
    # 1-column MXU pass.  b3 is a scalar in SMEM.  Written as a lane-dense
    # (1, TB) row so the store / writeback DMA is full-width, not 1-lane masked.
    v = jnp.sum(h2 * w3_ref[...], axis=-1) + b3_ref[0, 0]     # (TB,)
    o_ref[...] = v[None, :].astype(o_ref.dtype)               # (1, TB)


def prepare_params(params, matmul_dtype=jnp.float32):
    """One-time pad/cast of the weights (hoisted out of the per-call path)."""
    w1, b1, w2, b2, w3, b3 = params
    S, H = w1.shape
    Hp = _round_up(H, 128)   # lane-align hidden dim; zero padding is exact
    f32 = jnp.float32
    w1p = jnp.pad(w1.astype(f32), ((0, 0), (0, Hp - H))).astype(matmul_dtype)
    w2p = jnp.pad(w2.astype(f32), ((0, Hp - H), (0, Hp - H))).astype(matmul_dtype)
    b1p = jnp.pad(jnp.reshape(b1.astype(f32), (1, H)), ((0, 0), (0, Hp - H)))
    b2p = jnp.pad(jnp.reshape(b2.astype(f32), (1, H)), ((0, 0), (0, Hp - H)))
    w3p = jnp.pad(jnp.reshape(w3.astype(f32), (1, H)), ((0, 0), (0, Hp - H)))
    b3s = jnp.reshape(jnp.asarray(b3, f32), (1, 1))            # scalar -> SMEM
    return (w1p, b1p, w2p, b2p, w3p, b3s)


def _vmem_estimate(TB, S, Hp, wbytes):
    return (2 * TB * S * 4                           # state tiles (double-buffered f32)
            + 2 * ((S * Hp + Hp * Hp) * wbytes       # w1 + w2 (Pallas double-buffers
                   + 3 * Hp * 4)                     #  even constant-index blocks)
            + 3 * TB * Hp * 4                        # h1 / h2 / elementwise temps (f32)
            + 2 * TB * 4)                            # output rows (double-buffered)


def _pick_tile(B, block_b, S, Hp, wbytes, vmem_budget):
    if B > block_b:
        TB = _round_up(block_b, 128)                 # multi-block: lane-aligned tile
    elif B >= 256:
        # Split into (at least) two blocks so both v7x TensorCores get work.
        TB = _round_up(pl.cdiv(B, 2), 128)
    else:
        TB = _round_up(B, 8)                         # single block covers whole batch
    # Shrink the tile until the VMEM estimate fits the budget.
    while TB > 128 and _vmem_estimate(TB, S, Hp, wbytes) > vmem_budget:
        TB = max(128, _round_up(TB // 2, 128))
    return TB


def value_network(state, prepared_params, *, block_b=4096):
    """state: (B, state_dim) f32 -> (B, 1) f32. Matches PyTorch ValueNetwork.forward."""
    w1p, b1p, w2p, b2p, w3p, b3s = prepared_params
    B, S = state.shape
    Sw, Hp = w1p.shape
    assert Sw == S, "state_dim mismatch with prepared params"
    f32 = jnp.float32
    wbytes = jnp.dtype(w1p.dtype).itemsize

    # Physical VMEM (v7x: 64 MiB/TC, v5e/v6e: 128 MiB); leave compiler headroom.
    try:
        phys_vmem = int(pltpu.get_tpu_info().vmem_capacity_bytes)
    except Exception:
        phys_vmem = 64 * 1024 * 1024                 # conservative fallback (v7x)
    vmem_cap = min((phys_vmem * 7) // 8, 100 * 1024 * 1024)

    TB = _pick_tile(B, block_b, S, Hp, wbytes, vmem_cap // 2)
    n_blocks = pl.cdiv(B, TB)
    Bp = n_blocks * TB

    # Only the batch axis is zero-padded; the feature dim streams unpadded.
    xp = jnp.pad(state.astype(f32), ((0, Bp - B), (0, 0)))

    vmem_limit = int(min(max(2 * _vmem_estimate(TB, S, Hp, wbytes),
                             32 * 1024 * 1024), vmem_cap))

    grid_spec = pltpu.PrefetchScalarGridSpec(
        num_scalar_prefetch=0,
        grid=(n_blocks,),
        in_specs=[
            pl.BlockSpec((TB, S), lambda i: (i, 0)),            # state tile (streamed)
            pl.BlockSpec((S, Hp), lambda i: (0, 0)),            # w1 (VMEM-resident)
            pl.BlockSpec((1, Hp), lambda i: (0, 0)),            # b1
            pl.BlockSpec((Hp, Hp), lambda i: (0, 0)),           # w2
            pl.BlockSpec((1, Hp), lambda i: (0, 0)),            # b2
            pl.BlockSpec((1, Hp), lambda i: (0, 0)),            # w3 row (VPU head)
            pl.BlockSpec(memory_space=pltpu.MemorySpace.SMEM),  # b3 scalar
        ],
        # Lane-dense output: (1, Bp) row; each grid step fills its own TB lanes.
        out_specs=pl.BlockSpec((1, TB), lambda i: (0, i)),
    )

    out = pl.pallas_call(
        value_net_kernel,
        out_shape=jax.ShapeDtypeStruct((1, Bp), f32),
        grid_spec=grid_spec,
        compiler_params=pltpu.CompilerParams(
            dimension_semantics=("parallel",),   # batch blocks shard across TCs
            vmem_limit_bytes=vmem_limit,
        ),
    )(xp, w1p, b1p, w2p, b2p, w3p, b3s)
    return out[0, :B].reshape(B, 1)


def init_params(key, state_dim, hidden_dim):
    """Deterministic init mimicking PyTorch Linear default (U[-1/sqrt(fan_in), +])."""
    ks = jax.random.split(key, 6)

    def lin(kw, kb, fan_in, fan_out):
        bound = 1.0 / jnp.sqrt(fan_in)
        w = jax.random.uniform(kw, (fan_in, fan_out), jnp.float32, -bound, bound)
        b = jax.random.uniform(kb, (1, fan_out), jnp.float32, -bound, bound)
        return w, b

    w1, b1 = lin(ks[0], ks[1], state_dim, hidden_dim)
    w2, b2 = lin(ks[2], ks[3], hidden_dim, hidden_dim)
    w3, b3 = lin(ks[4], ks[5], hidden_dim, 1)
    return (w1, b1, w2, b2, w3, b3)


def value_network_ref(state, params, matmul_dtype=jnp.float32):
    """Pure-JAX reference; matmul_dtype mirrors the kernel's MXU operand dtype."""
    w1, b1, w2, b2, w3, b3 = params
    md = matmul_dtype
    h1 = jnp.maximum(
        jnp.dot(state.astype(md), w1.astype(md), preferred_element_type=jnp.float32)
        + b1, 0.0)
    h2 = jnp.maximum(
        jnp.dot(h1.astype(md), w2.astype(md), preferred_element_type=jnp.float32)
        + b2, 0.0)
    return jnp.dot(h2, w3, preferred_element_type=jnp.float32) + b3


if __name__ == "__main__":
    key = jax.random.PRNGKey(0)
    k_param, k_state, k_state2 = jax.random.split(key, 3)

    batch, state_dim, hidden_dim = 8, 16, 32
    params = init_params(k_param, state_dim, hidden_dim)
    prep_f32 = prepare_params(params, matmul_dtype=jnp.float32)   # pad/cast once
    state = jax.random.normal(k_state, (batch, state_dim), jnp.float32)

    out = jax.block_until_ready(value_network(state, prep_f32))
    assert out.shape == (batch, 1)
    ref = value_network_ref(state, params, matmul_dtype=jnp.float32)
    assert jnp.allclose(out, ref, atol=1e-4, rtol=1e-4), "mismatch vs f32 reference"

    # Multi-block grid path (batch split across >=2 blocks + batch padding).
    batch2 = 300
    state2 = jax.random.normal(k_state2, (batch2, state_dim), jnp.float32)
    out2 = jax.block_until_ready(value_network(state2, prep_f32))
    assert out2.shape == (batch2, 1)
    ref2 = value_network_ref(state2, params, matmul_dtype=jnp.float32)
    assert jnp.allclose(out2, ref2, atol=1e-4, rtol=1e-4), "mismatch on split batch"

    # Small-block path (several streamed tiles through the same resident weights).
    out3 = jax.block_until_ready(value_network(state2, prep_f32, block_b=128))
    assert jnp.allclose(out3, ref2, atol=1e-4, rtol=1e-4), "mismatch on tiled batch"

    # Optional bf16-MXU-operand variant (weights prepared once in bf16).
    prep_bf16 = prepare_params(params, matmul_dtype=jnp.bfloat16)
    out4 = jax.block_until_ready(value_network(state, prep_bf16))
    ref4 = value_network_ref(state, params, matmul_dtype=jnp.bfloat16)
    assert jnp.allclose(out4, ref4, atol=1e-4, rtol=1e-4), "mismatch vs bf16 reference"

    print("KERNEL_OK")
</pallas_src>

<mosaic_0001>
module attributes {stable_mosaic.version = 11 : i64} {
  func.func @value_net_kernel(%arg0: i32, %arg1: memref<8x16xf32, #tpu.memory_space<vmem>>, %arg2: memref<16x128xf32, #tpu.memory_space<vmem>>, %arg3: memref<1x128xf32, #tpu.memory_space<vmem>>, %arg4: memref<128x128xf32, #tpu.memory_space<vmem>>, %arg5: memref<1x128xf32, #tpu.memory_space<vmem>>, %arg6: memref<1x128xf32, #tpu.memory_space<vmem>>, %arg7: memref<1x1xf32, #tpu.memory_space<smem>>, %arg8: memref<1x8xf32, #tpu.memory_space<vmem>>) attributes {dimension_semantics = [#tpu.dimension_semantics<parallel>], iteration_bounds = array<i64: 1>, scalar_prefetch = 0 : i64, scratch_operands = 0 : i64, tpu.core_type = #tpu.core_type<tc>, window_params = [{transform_indices = @transform_0, window_bounds = array<i64: 8, 16>}, {pipeline_mode = #tpu.pipeline_mode<synchronous>, transform_indices = @transform_1, window_bounds = array<i64: 16, 128>}, {pipeline_mode = #tpu.pipeline_mode<synchronous>, transform_indices = @transform_2, window_bounds = array<i64: 1, 128>}, {pipeline_mode = #tpu.pipeline_mode<synchronous>, transform_indices = @transform_3, window_bounds = array<i64: 128, 128>}, {pipeline_mode = #tpu.pipeline_mode<synchronous>, transform_indices = @transform_4, window_bounds = array<i64: 1, 128>}, {pipeline_mode = #tpu.pipeline_mode<synchronous>, transform_indices = @transform_5, window_bounds = array<i64: 1, 128>}, {transform_indices = @transform_6, window_bounds = array<i64: 1, 1>}, {transform_indices = @transform_7, window_bounds = array<i64: 1, 8>}]} {
    %c0 = arith.constant 0 : index
    %c0_0 = arith.constant 0 : index
    %0 = vector.load %arg1[%c0, %c0_0] : memref<8x16xf32, #tpu.memory_space<vmem>>, vector<8x16xf32>
    %c0_1 = arith.constant 0 : index
    %c0_2 = arith.constant 0 : index
    %1 = vector.load %arg2[%c0_1, %c0_2] : memref<16x128xf32, #tpu.memory_space<vmem>>, vector<16x128xf32>
    %cst = arith.constant dense<0.000000e+00> : vector<8x128xf32>
    %2 = tpu.matmul %0, %1, %cst {dimension_numbers = #tpu.dot_dimension_numbers<[1], [0], [0], [1], [0, 0, 1, 1], [], []>} : vector<8x16xf32>, vector<16x128xf32>, vector<8x128xf32> -> vector<8x128xf32>
    %c0_3 = arith.constant 0 : index
    %c0_4 = arith.constant 0 : index
    %3 = vector.load %arg3[%c0_3, %c0_4] : memref<1x128xf32, #tpu.memory_space<vmem>>, vector<1x128xf32>
    %4 = vector.broadcast %3 : vector<1x128xf32> to vector<8x128xf32>
    %5 = arith.addf %2, %4 : vector<8x128xf32>
    %cst_5 = arith.constant 0.000000e+00 : f32
    %6 = vector.broadcast %cst_5 : f32 to vector<8x128xf32>
    %7 = arith.maximumf %5, %6 : vector<8x128xf32>
    %c0_6 = arith.constant 0 : index
    %c0_7 = arith.constant 0 : index
    %8 = vector.load %arg4[%c0_6, %c0_7] : memref<128x128xf32, #tpu.memory_space<vmem>>, vector<128x128xf32>
    %cst_8 = arith.constant dense<0.000000e+00> : vector<8x128xf32>
    %9 = tpu.matmul %7, %8, %cst_8 {dimension_numbers = #tpu.dot_dimension_numbers<[1], [0], [0], [1], [0, 0, 1, 1], [], []>} : vector<8x128xf32>, vector<128x128xf32>, vector<8x128xf32> -> vector<8x128xf32>
    %c0_9 = arith.constant 0 : index
    %c0_10 = arith.constant 0 : index
    %10 = vector.load %arg5[%c0_9, %c0_10] : memref<1x128xf32, #tpu.memory_space<vmem>>, vector<1x128xf32>
    %11 = vector.broadcast %10 : vector<1x128xf32> to vector<8x128xf32>
    %12 = arith.addf %9, %11 : vector<8x128xf32>
    %cst_11 = arith.constant 0.000000e+00 : f32
    %13 = vector.broadcast %cst_11 : f32 to vector<8x128xf32>
    %14 = arith.maximumf %12, %13 : vector<8x128xf32>
    %c0_12 = arith.constant 0 : index
    %c0_13 = arith.constant 0 : index
    %15 = vector.load %arg6[%c0_12, %c0_13] : memref<1x128xf32, #tpu.memory_space<vmem>>, vector<1x128xf32>
    %16 = vector.broadcast %15 : vector<1x128xf32> to vector<8x128xf32>
    %17 = arith.mulf %14, %16 : vector<8x128xf32>
    %cst_14 = arith.constant dense<0.000000e+00> : vector<8xf32>
    %18 = vector.multi_reduction <add>, %17, %cst_14 [1] : vector<8x128xf32> to vector<8xf32>
    %c0_15 = arith.constant 0 : index
    %c0_16 = arith.constant 0 : index
    %19 = memref.load %arg7[%c0_15, %c0_16] : memref<1x1xf32, #tpu.memory_space<smem>>
    %20 = vector.broadcast %19 : f32 to vector<8xf32>
    %21 = arith.addf %18, %20 : vector<8xf32>
    %22 = vector.shape_cast %21 : vector<8xf32> to vector<1x8xf32>
    %c0_17 = arith.constant 0 : index
    %c0_18 = arith.constant 0 : index
    %23 = vector.load %arg8[%c0_17, %c0_18] : memref<1x8xf32, #tpu.memory_space<vmem>>, vector<1x8xf32>
    tpu.vector_store %arg8[%c0_17, %c0_18], %22 {strides = array<i32>} : memref<1x8xf32, #tpu.memory_space<vmem>>, vector<1x8xf32>,
    return
  }
  func.func @transform_0(%arg0: i32) -> (i32, i32) {
    %c0_i32 = arith.constant 0 : i32
    %c0_i32_0 = arith.constant 0 : i32
    return %arg0, %c0_i32 : i32, i32
  }
  func.func @transform_1(%arg0: i32) -> (i32, i32) {
    %c0_i32 = arith.constant 0 : i32
    %c0_i32_0 = arith.constant 0 : i32
    %c0_i32_1 = arith.constant 0 : i32
    return %c0_i32, %c0_i32_0 : i32, i32
  }
  func.func @transform_2(%arg0: i32) -> (i32, i32) {
    %c0_i32 = arith.constant 0 : i32
    %c0_i32_0 = arith.constant 0 : i32
    %c0_i32_1 = arith.constant 0 : i32
    return %c0_i32, %c0_i32_0 : i32, i32
  }
  func.func @transform_3(%arg0: i32) -> (i32, i32) {
    %c0_i32 = arith.constant 0 : i32
    %c0_i32_0 = arith.constant 0 : i32
    %c0_i32_1 = arith.constant 0 : i32
    return %c0_i32, %c0_i32_0 : i32, i32
  }
  func.func @transform_4(%arg0: i32) -> (i32, i32) {
    %c0_i32 = arith.constant 0 : i32
    %c0_i32_0 = arith.constant 0 : i32
    %c0_i32_1 = arith.constant 0 : i32
    return %c0_i32, %c0_i32_0 : i32, i32
  }
  func.func @transform_5(%arg0: i32) -> (i32, i32) {
    %c0_i32 = arith.constant 0 : i32
    %c0_i32_0 = arith.constant 0 : i32
    %c0_i32_1 = arith.constant 0 : i32
    return %c0_i32, %c0_i32_0 : i32, i32
  }
  func.func @transform_6(%arg0: i32) -> (i32, i32) {
    %c0_i32 = arith.constant 0 : i32
    %c0_i32_0 = arith.constant 0 : i32
    %c0_i32_1 = arith.constant 0 : i32
    return %c0_i32, %c0_i32_0 : i32, i32
  }
  func.func @transform_7(%arg0: i32) -> (i32, i32) {
    %c0_i32 = arith.constant 0 : i32
    %c0_i32_0 = arith.constant 0 : i32
    return %c0_i32, %arg0 : i32, i32
  }
}

</mosaic_0001>

<bundles_post_ra>
// kernel: tpu_custom_call.1
= control target key start
LH: loop header
LB: loop body
LE: loop exit
PB: predicated region body
PF: predicated region fallthrough
CT: control target
= control target key end

     0   :  { %13 = vsyncpa [#allocation4], 0  ;;  %s517_s0 = inlined_call_operand.hbm [shape: f32[8,16], index: 0, kind: input, shape index: {}]   ;;  %s518_s1 = inlined_call_operand.hbm [shape: f32[16,128], index: 1, kind: input, shape index: {}]   ;;  %s519_s2 = inlined_call_operand.vmem [shape: f32[1,128], index: 2, kind: input, shape index: {}]   ;;  %s520_s3 = inlined_call_operand.hbm [shape: f32[128,128], index: 3, kind: input, shape index: {}]   ;;  %s521_s4 = inlined_call_operand.vmem [shape: f32[1,128], index: 4, kind: input, shape index: {}]   ;;  %s522_s5 = inlined_call_operand.vmem [shape: f32[1,128], index: 5, kind: input, shape index: {}]   ;;  %s523_s6 = inlined_call_operand.<no memory space> [shape: f32[1,1], index: 6, kind: input, shape index: {}]   ;;  %s524_s7 = inlined_call_operand.hbm [shape: f32[1,8], index: 7, kind: output, shape index: {}]  }
   0x1   :  { %14 = vsyncpa [#allocation7], 0 }
   0x2   :  { %15 = vsyncpa [#allocation5], 0  ;;  %s445_s24 = smov [#allocation6]  }
   0x3   :  { %s31_s25 = sshll.u32 %s445_s24, 4  ;;  %s32_s25 = int_to_ptr.vmem [resolvable:$true] %s31_s25 }
   0x4   :  { %s367_s26 = scalar_lea.vmem %s32_s25, 256  ;;  %p372_p1 = scmp.lt.s32.totalorder %s32_s25, %s32_s25 }
   0x5   :  { %p368_p0 = scmp.ne.s32.totalorder %s32_s25, %s367_s26  ;;  %p373_p2 = scmp.lt.s32.totalorder %s367_s26, %s367_s26 }
   0x7   :  { %p374_p3 = por %p373_p2, %p372_p1 }
   0x9   :  { %p375_p4 = pnand %p374_p3, %p368_p0 }
   0xb   :  { %378 = shalt.err (!%p375_p4)
}
   0xc   :  { %s446_s27 = smov 128   ;;  %s447_s28 = smov 8  }
   0xd   :  { %37 = dma.hbm_to_vmem [thread:$0]  %s518_s1, 256, %s32_s25, [#allocation7], %s446_s27, %s446_s27, %s447_s28  }
   0xe   :  { %s448_s8 = smov [#allocation3]   ;;  %s449_s10 = smov [#allocation8]  }
   0xf   :  { %s22_s9 = sshll.u32 %s448_s8, 4  ;;  %s45_s11 = sshll.u32 %s449_s10, 4  ;;  %s23_s9 = int_to_ptr.vmem [resolvable:$true] %s22_s9  ;;  %s46_s11 = int_to_ptr.vmem [resolvable:$true] %s45_s11 }
  0x10   :  { %s387_s12 = scalar_lea.vmem %s23_s9, 128  ;;  %p392_p6 = scmp.lt.s32.totalorder %s23_s9, %s23_s9 }
  0x11   :  { %p388_p5 = scmp.ne.s32.totalorder %s23_s9, %s387_s12  ;;  %p393_p7 = scmp.lt.s32.totalorder %s387_s12, %s387_s12 }
  0x13   :  { %p394_p8 = por %p393_p7, %p392_p6 }
  0x15   :  { %p395_p9 = pnand %p394_p8, %p388_p5 }
  0x17   :  { %398 = shalt.err (!%p395_p9)
}
  0x18   :  { %25 = dma.hbm_to_vmem [thread:$0]  %s517_s0, 128, %s23_s9, [#allocation4]  }
  0x19   :  { %s407_s15 = scalar_lea.vmem %s46_s11, 2048  ;;  %p412_p11 = scmp.lt.s32.totalorder %s46_s11, %s46_s11 }
  0x1a   :  { %p408_p10 = scmp.ne.s32.totalorder %s46_s11, %s407_s15  ;;  %p413_p12 = scmp.lt.s32.totalorder %s407_s15, %s407_s15 }
  0x1c   :  { %p414_p13 = por %p413_p12, %p412_p11 }
  0x1e   :  { %p415_p0 = pnand %p414_p13, %p408_p10 }
  0x20   :  { %418 = shalt.err (!%p415_p0)
}
  0x21   :  { %51 = dma.hbm_to_vmem [thread:$0]  %s520_s3, 2048, %s46_s11, [#allocation7], %s446_s27, %s446_s27, %s447_s28  }
  0x22   :  { %439 = dma.done.wait [#allocation4], 128  }
  0x23   :  { %440 = vsyncadd [#allocation4], 4294967168 }
  0x24   :  { %441 = dma.done.wait [#allocation7], 2304  }
  0x25   :  { %442 = vsyncadd [#allocation7], 4294964992  ;;  %v450_v0 = vmov 0.0   ;;  %vm451_vm0 = vmmov 0   ;;  %v69_v1 = vld [vmem:[#allocation6 + $0x8] sm:$0xff]  ;;  %v68_v2 = vld [vmem:[#allocation6] sm:$0xff]  ;;  %v260_v32 = vlaneseq  ;;  %v257_v35 = vstv %s523_s6 }
  0x26   :  { %309 = vmatprep.subr.mxu0 %v450_v0  ;;  %313 = vmatprep.mubr.msk.f32.mxu0 %vm451_vm0, %v450_v0  ;;  %v67_v3 = vld [vmem:[#allocation3] sm:$0xff]  ;;  %vm77_vm1 = vcmask 130048   ;;  %v167_v4 = vld [vmem:[#allocation8 + $0x78] sm:$0xff]  ;;  %v166_v5 = vld [vmem:[#allocation8 + $0x70] sm:$0xff]  ;;  %vm267_vm2 = vcmask 57344  }
  0x27   :  { %316 = vmatprep.subr.mxu1 %v450_v0  ;;  %348 = vmatprep.mubr.msk.f32.mxu1 %vm451_vm0, %v450_v0  ;;  %v165_v6 = vld [vmem:[#allocation8 + $0x68] sm:$0xff]  ;;  %v164_v7 = vld [vmem:[#allocation8 + $0x60] sm:$0xff]  ;;  %v163_v8 = vld [vmem:[#allocation8 + $0x58] sm:$0xff]  ;;  %v261_v33 = vand.u32 127, %v260_v32  ;;  %v263_v34 = vshrl.u32 %v260_v32, 7 }
  0x28   :  { %310 = vmatpush3.msra.mxu0 %v69_v1  ;;  %317 = vmatpush3.msra.mxu1 %v167_v4  ;;  %v162_v9 = vld [vmem:[#allocation8 + $0x50] sm:$0xff]  ;;  %v161_v10 = vld [vmem:[#allocation8 + $0x48] sm:$0xff]  ;;  %v160_v11 = vld [vmem:[#allocation8 + $0x40] sm:$0xff] }
  0x29   :  { %311 = vmatprep.subr.mxu0 %v450_v0  ;;  %318 = vmatprep.subr.mxu1 %v450_v0  ;;  %v159_v12 = vld [vmem:[#allocation8 + $0x38] sm:$0xff]  ;;  %v158_v13 = vld [vmem:[#allocation8 + $0x30] sm:$0xff]  ;;  %v157_v14 = vld [vmem:[#allocation8 + $0x28] sm:$0xff]  ;;  %v264_v36 = vsub.s32 %v261_v33, %v263_v34 }
  0x2a   :  { %312 = vmatpush3.msra.mxu0 %v68_v2  ;;  %319 = vmatpush3.msra.mxu1 %v166_v5  ;;  %v156_v15 = vld [vmem:[#allocation8 + $0x20] sm:$0xff]  ;;  %v155_v16 = vld [vmem:[#allocation8 + $0x18] sm:$0xff]  ;;  %v154_v17 = vld [vmem:[#allocation8 + $0x10] sm:$0xff] }
  0x2b   :  { %314 = vmatmul.mubr.msk.f32.vlgmr.msra.gmra.mxu0 %vm77_vm1, %v67_v3  ;;  %320 = vmatprep.subr.mxu1 %v450_v0  ;;  %v153_v18 = vld [vmem:[#allocation8 + $0x8] sm:$0xff]  ;;  %v152_v19 = vld [vmem:[#allocation8] sm:$0xff] }
  0x2c   :  { %321 = vmatpush3.msra.mxu1 %v165_v6  ;;  %v285_v20 = vld [vmem:[%s519_s2] ss:$0 sm:$0xff] }
  0x2d   :  { %322 = vmatprep.subr.mxu1 %v450_v0  ;;  %v287_v25 = vld [vmem:[%s521_s4] ss:$0 sm:$0xff]  ;;  %s452_s4 = smov [#allocation9]  }
  0x2e   :  { %323 = vmatpush3.msra.mxu1 %v164_v7  ;;  %v288_v29 = vld [vmem:[%s522_s5] ss:$0 sm:$0xff]  ;;  %s275_s22 = sshll.u32 %s452_s4, 4  ;;  %s276_s22 = int_to_ptr.vmem [resolvable:$true] %s275_s22 }
  0x2f   :  { %324 = vmatprep.subr.mxu1 %v450_v0  ;;  %s419_s5 = scalar_lea.vmem %s276_s22, 16  ;;  %s423_s23 = scalar_lea.vmem %s276_s22, 32 }
  0x30   :  { %325 = vmatpush3.msra.mxu1 %v163_v8  ;;  %p420_p1 = scmp.ne.s32.totalorder %s276_s22, %s419_s5  ;;  %p424_p2 = scmp.lt.s32.totalorder %s276_s22, %s276_s22 }
  0x31   :  { %326 = vmatprep.subr.mxu1 %v450_v0  ;;  %p425_p3 = scmp.lt.s32.totalorder %s423_s23, %s419_s5 }
  0x32   :  { %327 = vmatpush3.msra.mxu1 %v162_v9 }
  0x33   :  { %328 = vmatprep.subr.mxu1 %v450_v0  ;;  %p426_p4 = por %p425_p3, %p424_p2 }
  0x34   :  { %329 = vmatpush3.msra.mxu1 %v161_v10 }
  0x35   :  { %330 = vmatprep.subr.mxu1 %v450_v0  ;;  %p427_p5 = pnand %p426_p4, %p420_p1 }
  0x36   :  { %331 = vmatpush3.msra.mxu1 %v160_v11 }
  0x37   :  { %332 = vmatprep.subr.mxu1 %v450_v0 }
  0x38   :  { %333 = vmatpush3.msra.mxu1 %v159_v12 }
  0x39   :  { %334 = vmatprep.subr.mxu1 %v450_v0 }
  0x3a   :  { %335 = vmatpush3.msra.mxu1 %v158_v13 }
  0x3b   :  { %336 = vmatprep.subr.mxu1 %v450_v0 }
  0x3c   :  { %337 = vmatpush3.msra.mxu1 %v157_v14 }
  0x3d   :  { %338 = vmatprep.subr.mxu1 %v450_v0 }
  0x3e   :  { %339 = vmatpush3.msra.mxu1 %v156_v15 }
  0x3f   :  { %340 = vmatprep.subr.mxu1 %v450_v0 }
  0x40   :  { %341 = vmatpush3.msra.mxu1 %v155_v16 }
  0x41   :  { %342 = vmatprep.subr.mxu1 %v450_v0 }
  0x42   :  { %343 = vmatpush3.msra.mxu1 %v154_v17 }
  0x43   :  { %344 = vmatprep.subr.mxu1 %v450_v0 }
  0x44   :  { %345 = vmatpush3.msra.mxu1 %v153_v18 }
  0x45   :  { %346 = vmatprep.subr.mxu1 %v450_v0 }
  0x46   :  { %347 = vmatpush3.msra.mxu1 %v152_v19 }
  0xeb   :  { %v147_v21 = vpop.f32.mrf.mxu0 }
  0xec   :  { %v148_v22 = vadd.f32 %v285_v20, %v147_v21 }
  0xed   :  { %v315_v23 = vpop.f32.mrf.mxu0 }
  0xee   :  { %v151_v24 = vmax.f32 %v148_v22, 0.0 }
  0xf0   :  { %349 = vmatmul.mubr.f32.vlgmr.msra.gmra.mxu1 %v151_v24 }
 0x1b0   :  { %v241_v26 = vpop.f32.mrf.mxu1 }
 0x1b1   :  { %v242_v27 = vadd.f32 %v287_v25, %v241_v26 }
 0x1b2   :  { %v350_v28 = vpop.f32.mrf.mxu1 }
 0x1b3   :  { %v245_v30 = vmax.f32 %v242_v27, 0.0 }
 0x1b5   :  { %v253_v31 = vmul.f32 %v288_v29, %v245_v30 }
 0x1b7   :  { %254 = vadd.xlane.f32.xlu0 %v253_v31 }
 0x240   :  { %v255_v37 = vpop.xlane.xlu0 %254 }
 0x241   :  { %v258_v38 = vadd.f32 %v257_v35, %v255_v37 }
 0x243   :  { %v265_v39 = vrot.slane %v258_v38, %v264_v36 }
 0x245   :  { %268 = vst.msk [vmem:[#allocation9] sm:$0x1] %vm267_vm2, %v265_v39 }
 0x246   :  { %430 = shalt.err (!%p427_p5)
}
 0x247   :  { %278 = dma.vmem_to_hbm [thread:$0]  %s276_s22, 16, %s524_s7, [#allocation5]  }
 0x248   :  { %443 = dma.done.wait [#allocation5], 16  }
 0x249   :  { %444 = vsyncadd [#allocation5], 4294967280 }
 0x24a   :  { %282 = vsyncpa [#allocation4], 1 }
 0x24b   :  { %283 = vsyncpa [#allocation7], 1 }
 0x24c   :  { %284 = vsyncpa [#allocation5], 1 }

</bundles_post_ra>
